<compile_context>
chip_gen: v7x
topology: tpu7x:2x2x1
jax: 0.10.0
libtpu: 0.0.40
codegen_flags: <defaults>
</compile_context>

<pallas_src>
import functools

import jax
import jax.numpy as jnp
from jax.experimental import pallas as pl
from jax.experimental.pallas import tpu as pltpu


def _round_up(x, m):
    return -(-x // m) * m


def _cdiv(a, b):
    return -(-a // b)


def _sublanes(dtype):
    # sublane tile height per element size: 8 for 4B, 16 for 2B, 32 for 1B
    return max(8, 32 // jnp.dtype(dtype).itemsize)


def _chip_info():
    """(tensorcores_per_chip, vmem_bytes_per_core, has_int8_mxu).

    Conservative defaults (v7x-like: 2 cores, 64 MiB VMEM, no int MXU) when
    the generation cannot be identified.
    """
    kind = ""
    try:
        kind = jax.devices()[0].device_kind.lower()
    except Exception:
        pass
    if "v7" in kind:
        return 2, 64 << 20, False
    if "v6" in kind:
        return 1, 128 << 20, True
    if "v5e" in kind or "v5 lite" in kind or "v5lite" in kind:
        return 1, 128 << 20, True
    return 2, 64 << 20, False


def _pick_tile(hw, per_lane_bytes, *, n_cores, budget_bytes, max_tile):
    """Lane tile: as wide as the VMEM budget allows (multiple of 128)."""
    hw_pad = _round_up(hw, 128)
    tile = min(budget_bytes // per_lane_bytes, max_tile, hw_pad)
    tile = max(128, (tile // 128) * 128)
    # Multi-TensorCore chips (v7x): keep >= 2 grid steps per core so each
    # core's BlockSpec pipeline still has an iteration to overlap DMA with.
    # Single-core chips (v5e/v6e): never force a split (pure overhead).
    min_steps = 2 * n_cores if n_cores >= 2 else 1
    if min_steps > 1 and _cdiv(hw, tile) < min_steps and hw_pad >= min_steps * 128:
        tile = max(128, (hw_pad // min_steps) // 128 * 128)
    return tile


def _seg_kernel(onehot_ref, masks_ref, out_ref, *, acc_dtype, cast_to):
    # onehot_ref: (C+1, N)  -- row 0 = foreground indicator, row c>=1 = (label == c)
    # masks_ref : (N, TILE) -- masks spatial tile in their native dtype
    # out_ref   : (C+1, TILE) f32
    masks = masks_ref[...]
    if cast_to == "bitcast_i8":
        masks = pltpu.bitcast(masks, jnp.int8)   # free reinterpret of 0/1 uint8
    elif cast_to is not None:
        masks = masks.astype(cast_to)            # only for int masks on chips w/o int MXU
    seg = jnp.dot(onehot_ref[...], masks, preferred_element_type=acc_dtype)
    seg = seg.astype(jnp.float32)
    # Row 0 already holds the foreground sum: rewrite it as background and
    # store the whole block exactly once (single lane-dense vst stream).
    bg = 1.0 - jnp.minimum(seg, 1.0)
    row0 = jax.lax.broadcasted_iota(jnp.int32, seg.shape, 0) == 0
    out_ref[...] = jnp.where(row0, bg, seg)


@functools.partial(jax.jit, static_argnames=("num_classes", "max_tile"))
def build_segmentation_tensor(masks, labels, num_classes, max_tile=16384):
    """masks: (N, H, W) binary masks (f32 / bf16 / uint8); labels: (N,) int.

    Returns (num_classes+1, H, W) f32, matching the PyTorch module.
    """
    n, h, w = masks.shape
    c1 = num_classes + 1
    hw = h * w
    masks_flat = masks.reshape(n, hw)  # free view under jit

    n_cores, vmem_cap, has_int8_mxu = _chip_info()

    md = jnp.dtype(masks_flat.dtype)
    cast_extra = 0
    if jnp.issubdtype(md, jnp.floating):
        # Matmul in the masks' native dtype; cast only the tiny one-hot.
        onehot_dtype, acc_dtype, cast_to = md, jnp.float32, None
    elif has_int8_mxu:
        # 0/1 integer masks on v5e/v6e: int8 MXU path, int32 accumulate.
        onehot_dtype, acc_dtype = jnp.int8, jnp.int32
        cast_to = None if md == jnp.int8 else "bitcast_i8"
    else:
        # v7x has no integer MXU: widen integer masks to bf16 in VMEM (exact for 0/1).
        onehot_dtype, acc_dtype, cast_to = jnp.bfloat16, jnp.float32, jnp.bfloat16
        cast_extra = _round_up(n, _sublanes(jnp.bfloat16)) * 2  # per-lane bf16 copy

    labels_i = labels.astype(jnp.int32)
    classes = jnp.arange(c1, dtype=jnp.int32)[:, None]                  # (C+1, 1)
    onehot = labels_i[None, :] == classes                               # (C+1, N)
    fg = (labels_i[None, :] >= 1) & (labels_i[None, :] <= num_classes)  # (1, N)
    # Row 0 never survives the background rewrite, so carry the foreground
    # indicator there: the matmul emits the foreground sum directly in row 0.
    onehot = jnp.where(classes == 0, fg, onehot).astype(onehot_dtype)

    # Per-lane VMEM cost of the double-buffered pipeline (sublane-padded rows).
    mask_rows = _round_up(n, _sublanes(md))
    out_rows = _round_up(c1, 8)                      # f32 output / accumulator
    per_lane = (2 * mask_rows * md.itemsize          # 2x masks input buffers
                + 2 * out_rows * 4                   # 2x output buffers
                + out_rows * 4                       # matmul result scratch
                + cast_extra)

    budget = (40 << 20) if n_cores >= 2 else (48 << 20)
    tile = _pick_tile(hw, per_lane, n_cores=n_cores,
                      budget_bytes=budget, max_tile=max_tile)
    grid = _cdiv(hw, tile)

    onehot_bytes = (2 * _round_up(c1, _sublanes(onehot_dtype))
                    * _round_up(n, 128) * jnp.dtype(onehot_dtype).itemsize)
    vmem_est = per_lane * tile + onehot_bytes
    # <=48 MiB request on 64 MiB-VMEM chips (v7x); larger cap elsewhere.
    vmem_cap_limit = (48 << 20) if vmem_cap <= (64 << 20) else (96 << 20)
    vmem_limit = int(min(vmem_cap_limit, max(32 << 20, vmem_est + (8 << 20))))

    kernel = functools.partial(_seg_kernel, acc_dtype=acc_dtype, cast_to=cast_to)

    out_flat = pl.pallas_call(
        kernel,
        out_shape=jax.ShapeDtypeStruct((c1, hw), jnp.float32),
        grid_spec=pltpu.PrefetchScalarGridSpec(
            num_scalar_prefetch=0,
            grid=(grid,),
            in_specs=[
                pl.BlockSpec((c1, n), lambda j: (0, 0)),     # resident one-hot matrix
                pl.BlockSpec((n, tile), lambda j: (0, j)),   # masks spatial tile
            ],
            out_specs=pl.BlockSpec((c1, tile), lambda j: (0, j)),  # lane-dense output
        ),
        compiler_params=pltpu.CompilerParams(
            dimension_semantics=("parallel",),
            vmem_limit_bytes=vmem_limit,
        ),
    )(onehot, masks_flat)

    return out_flat.reshape(c1, h, w)


def segmentation_mask_with_background_forward(image, target, num_classes):
    """Mirrors SegmentationMaskTensorWithBackground_masks.forward (keeps 'masks')."""
    h, w = image.shape[-2], image.shape[-1]
    masks = target["masks"]
    labels = target["labels"]
    assert masks.shape[-2:] == (h, w)
    seg = build_segmentation_tensor(masks, labels, num_classes)
    target = dict(target)
    target["segmentation_mask"] = seg  # 'masks' is NOT removed
    return image, target


if __name__ == "__main__":
    key = jax.random.PRNGKey(0)
    k_img, k_masks, k_labels = jax.random.split(key, 3)

    num_classes = 4
    N, H, W = 8, 16, 20  # H*W = 320: exercises ragged lane blocks

    image = jax.random.normal(k_img, (3, H, W), dtype=jnp.float32)  # CHW like torch
    # binary instance masks
    masks = (jax.random.uniform(k_masks, (N, H, W)) > 0.7).astype(jnp.float32)
    # labels in [1, num_classes] (foreground classes), as in detection targets
    labels = jax.random.randint(k_labels, (N,), 1, num_classes + 1, dtype=jnp.int32)

    target = {"masks": masks, "labels": labels}
    image_out, target_out = segmentation_mask_with_background_forward(
        image, target, num_classes
    )
    seg = jax.block_until_ready(target_out["segmentation_mask"])

    # reference in plain JAX semantics (exact: f32 matmul path, f32 accumulate)
    ref = jnp.zeros((num_classes + 1, H, W), jnp.float32)
    for i in range(N):
        ref = ref.at[labels[i]].add(masks[i])
    ref = ref.at[0].set(1.0 - jnp.minimum(ref[1:].sum(axis=0), 1.0))

    assert seg.shape == (num_classes + 1, H, W)
    assert jnp.allclose(seg, ref, atol=1e-6), "mismatch vs reference (default tiling)"
    assert "masks" in target_out  # masks are NOT removed

    # Also exercise the multi-step grid + ragged-last-block pipeline path.
    seg_small = jax.block_until_ready(
        build_segmentation_tensor(masks, labels, num_classes, max_tile=128))
    assert jnp.allclose(seg_small, ref, atol=1e-6), "mismatch vs reference (tile=128)"

    print("KERNEL_OK")
</pallas_src>

<mosaic_0001>
module attributes {stable_mosaic.version = 11 : i64} {
  func.func @_seg_kernel(%arg0: i32, %arg1: memref<5x8xf32, #tpu.memory_space<vmem>>, %arg2: memref<8x384xf32, #tpu.memory_space<vmem>>, %arg3: memref<5x384xf32, #tpu.memory_space<vmem>>) attributes {dimension_semantics = [#tpu.dimension_semantics<parallel>], iteration_bounds = array<i64: 1>, scalar_prefetch = 0 : i64, scratch_operands = 0 : i64, tpu.core_type = #tpu.core_type<tc>, window_params = [{pipeline_mode = #tpu.pipeline_mode<synchronous>, transform_indices = @transform_0, window_bounds = array<i64: 5, 8>}, {transform_indices = @transform_1, window_bounds = array<i64: 8, 384>}, {transform_indices = @transform_2, window_bounds = array<i64: 5, 384>}]} {
    %c0 = arith.constant 0 : index
    %c0_0 = arith.constant 0 : index
    %0 = vector.load %arg2[%c0, %c0_0] : memref<8x384xf32, #tpu.memory_space<vmem>>, vector<8x384xf32>
    %c0_1 = arith.constant 0 : index
    %c0_2 = arith.constant 0 : index
    %1 = vector.load %arg1[%c0_1, %c0_2] : memref<5x8xf32, #tpu.memory_space<vmem>>, vector<5x8xf32>
    %cst = arith.constant dense<0.000000e+00> : vector<5x384xf32>
    %2 = tpu.matmul %1, %0, %cst {dimension_numbers = #tpu.dot_dimension_numbers<[1], [0], [0], [1], [0, 0, 1, 1], [], []>} : vector<5x8xf32>, vector<8x384xf32>, vector<5x384xf32> -> vector<5x384xf32>
    %cst_3 = arith.constant 1.000000e+00 : f32
    %3 = vector.broadcast %cst_3 : f32 to vector<5x384xf32>
    %4 = arith.minimumf %2, %3 : vector<5x384xf32>
    %cst_4 = arith.constant 1.000000e+00 : f32
    %5 = vector.broadcast %cst_4 : f32 to vector<5x384xf32>
    %6 = arith.subf %5, %4 : vector<5x384xf32>
    %7 = tpu.iota {dimensions = array<i32: 0>} : vector<5x384xi32>
    %c0_i32 = arith.constant 0 : i32
    %8 = vector.broadcast %c0_i32 : i32 to vector<5x384xi32>
    %9 = arith.cmpi eq, %7, %8 : vector<5x384xi32>
    %10 = arith.select %9, %6, %2 : vector<5x384xi1>, vector<5x384xf32>
    %c0_5 = arith.constant 0 : index
    %c0_6 = arith.constant 0 : index
    %11 = vector.load %arg3[%c0_5, %c0_6] : memref<5x384xf32, #tpu.memory_space<vmem>>, vector<5x384xf32>
    tpu.vector_store %arg3[%c0_5, %c0_6], %10 {strides = array<i32>} : memref<5x384xf32, #tpu.memory_space<vmem>>, vector<5x384xf32>,
    return
  }
  func.func @transform_0(%arg0: i32) -> (i32, i32) {
    %c0_i32 = arith.constant 0 : i32
    %c0_i32_0 = arith.constant 0 : i32
    %c0_i32_1 = arith.constant 0 : i32
    return %c0_i32, %c0_i32_0 : i32, i32
  }
  func.func @transform_1(%arg0: i32) -> (i32, i32) {
    %c0_i32 = arith.constant 0 : i32
    %c0_i32_0 = arith.constant 0 : i32
    return %c0_i32, %arg0 : i32, i32
  }
  func.func @transform_2(%arg0: i32) -> (i32, i32) {
    %c0_i32 = arith.constant 0 : i32
    %c0_i32_0 = arith.constant 0 : i32
    return %c0_i32, %arg0 : i32, i32
  }
}

</mosaic_0001>

<bundles_post_ra>
// kernel: build_segmentation_tensor.1
= control target key start
LH: loop header
LB: loop body
LE: loop exit
PB: predicated region body
PF: predicated region fallthrough
CT: control target
= control target key end

     0   :  { %v190_v0 = vmov 0.0   ;;  %vm191_vm0 = vmmov 0   ;;  %vm15_vm1 = vcmask 64512   ;;  %v166_v5 = vlaneseq  ;;  %s228_s1 = inlined_call_operand.vmem [shape: f32[8,320], index: 1, kind: input, shape index: {}]   ;;  %s229_s0 = inlined_call_operand.vmem [shape: f32[5,8], index: 0, kind: input, shape index: {}]   ;;  %s230_s2 = inlined_call_operand.vmem [shape: f32[5,320], index: 2, kind: output, shape index: {}]  }
   0x1   :  { %183 = vmatprep.subr.mxu1 %v190_v0  ;;  %v12_v1 = vld [vmem:[%s228_s1 + $0x8] sm:$0xff]  ;;  %v13_v2 = vld [vmem:[%s228_s1 + $0x10] sm:$0xff]  ;;  %185 = vmatprep.mubr.msk.f32.mxu1 %vm191_vm0, %v190_v0  ;;  %v11_v3 = vld [vmem:[%s228_s1] sm:$0xff] }
   0x2   :  { %19 = vmatprep.subr.mxu0 %v12_v1  ;;  %184 = vmatpush3.msra.mxu1 %v13_v2  ;;  %v14_v4 = vld [vmem:[%s229_s0] sm:$0x1f]  ;;  %v167_v6 = vshrl.u32 %v166_v5, 7 }
   0x3   :  { %20 = vmatpush1.msra.mxu0 %v11_v3  ;;  %83 = vmatprep.mubr.f32.mxu0 %v190_v0 }
   0x4   :  { %186 = vmatmul.mubr.msk.f32.vlgmr.msra.gmra.mrb[0].mxu1 %vm15_vm1, %v14_v4  ;;  %179 = vmatmul.mubr.msk.f32.vlgmr.msra.gmra.mrb[0].mxu0 %vm15_vm1, %v14_v4  ;;  %vm168_vm2 = vcmp.eq.s32.totalorder %v167_v6, 0 }
  0xd7   :  { %v156_v7 = vpop.f32.mrb[0].mxu1  ;;  %v85_v8 = vpop.f32.mrb[0].mxu0 }
  0xd8   :  { %v162_v9 = vmin.f32 %v156_v7, 1.0  ;;  %v160_v10 = vmin.f32 %v85_v8, 1.0  ;;  %v87_v11 = vpop.f32.mrb[1].mxu0  ;;  %v187_v12 = vpop.f32.mrb[1].mxu1 }
  0xd9   :  { %v161_v13 = vmin.f32 %v87_v11, 1.0 }
  0xda   :  { %v165_v14 = vsub.f32 1.0, %v162_v9  ;;  %v163_v15 = vsub.f32 1.0, %v160_v10 }
  0xdb   :  { %v164_v16 = vsub.f32 1.0, %v161_v13 }
  0xdc   :  { %v171_v17 = vsel %vm168_vm2, %v165_v14, %v156_v7  ;;  %v169_v18 = vsel %vm168_vm2, %v163_v15, %v85_v8 }
  0xdd   :  { %174 = vst [vmem:[%s230_s2 + $0x10] sm:$0x1f] %v171_v17  ;;  %172 = vst [vmem:[%s230_s2] sm:$0x1f] %v169_v18  ;;  %v170_v19 = vsel %vm168_vm2, %v164_v16, %v87_v11 }
  0xde   :  { %173 = vst [vmem:[%s230_s2 + $0x8] sm:$0x1f] %v170_v19 }

</bundles_post_ra>
